<compile_context>
chip_gen: v7x
topology: tpu7x:2x2x1
jax: 0.10.0
libtpu: 0.0.40
codegen_flags: <defaults>
</compile_context>

<pallas_src>
import functools

import jax
import jax.numpy as jnp
from jax import lax
from jax.experimental import pallas as pl
from jax.experimental.pallas import tpu as pltpu

IMAGENET_MEAN = (123.675, 116.28, 103.53)
IMAGENET_STD = (58.395, 57.12, 57.375)

# Explicit scoped-VMEM limit: above the v5e default (16 MiB) so larger tiles
# pipeline properly, but below v7x's 64 MiB physical capacity.
_VMEM_LIMIT_BYTES = 48 * 1024 * 1024


def _layernorm(x, g, b, eps=1e-5):
    mean = jnp.mean(x, axis=-1, keepdims=True)
    var = jnp.mean(jnp.square(x - mean), axis=-1, keepdims=True)
    return (x - mean) * lax.rsqrt(var + eps) * g + b


# --------------------------- stem (patch embed) -----------------------------

def _stem_kernel(x_ref, w_ref, posb_ref, o_ref):
    # x_ref: (1, tn, K) bf16 raw-pixel patches (channel padded to 4 so K is a
    # multiple of 128). Mean/std normalization is folded into w; the conv
    # bias is pre-added into posb.
    y = jnp.dot(x_ref[0], w_ref[...], preferred_element_type=jnp.float32)
    o_ref[0] = (y + posb_ref[...]).astype(o_ref.dtype)


def patch_embed(patches, w_bf16, pos_bias, *, token_tile):
    B, N, K = patches.shape
    D = w_bf16.shape[1]
    tn = token_tile
    return pl.pallas_call(
        _stem_kernel,
        grid=(B, N // tn),
        in_specs=[pl.BlockSpec((1, tn, K), lambda b, n: (b, n, 0)),
                  pl.BlockSpec((K, D), lambda b, n: (0, 0)),
                  pl.BlockSpec((tn, D), lambda b, n: (n, 0))],
        out_specs=pl.BlockSpec((1, tn, D), lambda b, n: (b, n, 0)),
        out_shape=jax.ShapeDtypeStruct((B, N, D), jnp.bfloat16),
        compiler_params=pltpu.CompilerParams(
            dimension_semantics=("parallel", "parallel"),
            vmem_limit_bytes=_VMEM_LIMIT_BYTES),
    )(patches, w_bf16, pos_bias)


# ----------------------- encoder part 1: LN1 + fused QKV --------------------

def _qkv_kernel(x_ref, ln1g_ref, ln1b_ref, wqkv_ref, bqkv_ref,
                q_ref, k_ref, v_ref, *, hidden):
    D = hidden
    x = x_ref[0].astype(jnp.float32)
    h = _layernorm(x, ln1g_ref[...], ln1b_ref[...])
    qkv = jnp.dot(h.astype(jnp.bfloat16), wqkv_ref[...],
                  preferred_element_type=jnp.float32) + bqkv_ref[...]
    # column splits are 256-lane aligned (no sub-vreg relayout)
    q_ref[0] = qkv[:, :D].astype(q_ref.dtype)
    k_ref[0] = qkv[:, D:2 * D].astype(k_ref.dtype)
    v_ref[0] = qkv[:, 2 * D:].astype(v_ref.dtype)


def qkv_proj(x, params, *, token_tile):
    B, N, D = x.shape
    tn = token_tile

    def tok_spec():
        return pl.BlockSpec((1, tn, D), lambda b, n: (b, n, 0))

    def const(shape):
        return pl.BlockSpec(shape, lambda b, n: (0,) * len(shape))

    qkv_out = jax.ShapeDtypeStruct((B, N, D), jnp.bfloat16)
    return pl.pallas_call(
        functools.partial(_qkv_kernel, hidden=D),
        grid=(B, N // tn),
        in_specs=[tok_spec(),
                  const((1, D)), const((1, D)),
                  const((D, 3 * D)), const((1, 3 * D))],
        out_specs=(tok_spec(), tok_spec(), tok_spec()),
        out_shape=(qkv_out, qkv_out, qkv_out),
        compiler_params=pltpu.CompilerParams(
            dimension_semantics=("parallel", "parallel"),
            vmem_limit_bytes=_VMEM_LIMIT_BYTES),
    )(x, params["ln1_g"], params["ln1_b"], params["wqkv"], params["bqkv"])


# ------------- encoder part 2: flash attention + Wo + LN2 + FFN -------------

def _attn_ffn_kernel(x_ref, q_ref, k_ref, v_ref,
                     wo_ref, bo_ref, ln2g_ref, ln2b_ref,
                     w1_ref, b1_ref, w2_ref, b2_ref,
                     o_ref,
                     m_sc, l_sc, acc_sc, qh_sc,
                     *, num_heads, head_dim):
    H, hd = num_heads, head_dim
    D = H * hd
    tq = q_ref.shape[1]
    tk = k_ref.shape[1]
    ki = pl.program_id(2)

    @pl.when(ki == 0)
    def _():
        m_sc[...] = jnp.full_like(m_sc, -jnp.inf)
        l_sc[...] = jnp.zeros_like(l_sc)
        acc_sc[...] = jnp.zeros_like(acc_sc)
        # head-major Q cached once per query tile (attention scale is already
        # folded into the Q projection weights).
        qh_sc[...] = jnp.transpose(q_ref[0].reshape(tq, H, hd), (1, 0, 2))

    kh = jnp.transpose(k_ref[0].reshape(tk, H, hd), (1, 0, 2))
    vh = jnp.transpose(v_ref[0].reshape(tk, H, hd), (1, 0, 2))

    # all heads in one batched contraction -> dense MXU push cadence
    s = jnp.einsum('hqd,hkd->hqk', qh_sc[...], kh,
                   preferred_element_type=jnp.float32)

    # flash-style online softmax across KV tiles
    m_new = jnp.maximum(m_sc[...], jnp.max(s, axis=-1, keepdims=True))
    alpha = jnp.exp(m_sc[...] - m_new)
    # TODO(synk): compute exp in bf16 on v6e/v7x (EUP bf16 ~2x); kept f32 here
    # so the same kernel also runs on v5e.
    p = jnp.exp(s - m_new)
    l_sc[...] = alpha * l_sc[...] + jnp.sum(p, axis=-1, keepdims=True)
    acc_sc[...] = alpha * acc_sc[...] + jnp.einsum(
        'hqk,hkd->hqd', p.astype(jnp.bfloat16), vh,
        preferred_element_type=jnp.float32)
    m_sc[...] = m_new

    @pl.when(ki == pl.num_programs(2) - 1)
    def _():
        attn = acc_sc[...] * pl.reciprocal(l_sc[...], approx=True)
        attn = jnp.transpose(attn, (1, 0, 2)).reshape(tq, D)
        o = jnp.dot(attn.astype(jnp.bfloat16), wo_ref[...],
                    preferred_element_type=jnp.float32) + bo_ref[...]
        x1 = x_ref[0].astype(jnp.float32) + o            # residual in f32

        h = _layernorm(x1, ln2g_ref[...], ln2b_ref[...])
        h = jnp.dot(h.astype(jnp.bfloat16), w1_ref[...],
                    preferred_element_type=jnp.float32) + b1_ref[...]
        h = jnp.maximum(h, 0.0)
        h = jnp.dot(h.astype(jnp.bfloat16), w2_ref[...],
                    preferred_element_type=jnp.float32) + b2_ref[...]
        o_ref[0] = (x1 + h).astype(o_ref.dtype)


def attn_ffn(x, q, k, v, params, *, num_heads, q_tile, kv_tile, out_dtype):
    B, N, D = x.shape
    F = params["w1"].shape[1]
    hd = D // num_heads
    tq, tk = q_tile, kv_tile

    def q_spec():
        return pl.BlockSpec((1, tq, D), lambda b, qi, ki: (b, qi, 0))

    def kv_spec():
        return pl.BlockSpec((1, tk, D), lambda b, qi, ki: (b, ki, 0))

    def const(shape):
        return pl.BlockSpec(shape, lambda b, qi, ki: (0,) * len(shape))

    return pl.pallas_call(
        functools.partial(_attn_ffn_kernel, num_heads=num_heads, head_dim=hd),
        grid=(B, N // tq, N // tk),
        in_specs=[q_spec(), q_spec(), kv_spec(), kv_spec(),
                  const((D, D)), const((1, D)),
                  const((1, D)), const((1, D)),
                  const((D, F)), const((1, F)),
                  const((F, D)), const((1, D))],
        out_specs=pl.BlockSpec((1, tq, D), lambda b, qi, ki: (b, qi, 0)),
        out_shape=jax.ShapeDtypeStruct((B, N, D), out_dtype),
        scratch_shapes=[pltpu.VMEM((num_heads, tq, 1), jnp.float32),   # m
                        pltpu.VMEM((num_heads, tq, 1), jnp.float32),   # l
                        pltpu.VMEM((num_heads, tq, hd), jnp.float32),  # acc
                        pltpu.VMEM((num_heads, tq, hd), jnp.bfloat16)],
        compiler_params=pltpu.CompilerParams(
            dimension_semantics=("parallel", "parallel", "arbitrary"),
            vmem_limit_bytes=_VMEM_LIMIT_BYTES),
    )(x, q, k, v, params["wo"], params["bo"],
      params["ln2_g"], params["ln2_b"],
      params["w1"], params["b1"], params["w2"], params["b2"])


# ------------------------------ module wrapper ------------------------------

class GroundingDINOVisionTowerPallas:
    """Pallas version of GroundingDINOVisionTower's encoder-only forward.

    Produces image features of shape (B, num_tokens, 256); hidden_size = 256
    matches the PyTorch module's `hidden_size` property.
    """

    def __init__(self, image_size=32, patch_size=8, num_heads=8,
                 ffn_dim=512, num_layers=2, q_tile=None, kv_tile=None,
                 key=None):
        # TODO(synk): FixScaleResize / PackDetInputs PIL preprocessing, RAM++
        # tag generation and the BERT language branch are host-side /
        # external models with no Pallas equivalent.
        # TODO(synk): the real encoder is a Swin backbone + multi-scale
        # deformable attention; replaced here by patch embedding + standard
        # dense multi-head self-attention.
        self.hidden_size = 256
        self.image_size = image_size
        self.patch_size = patch_size
        self.num_heads = num_heads
        self.ffn_dim = ffn_dim
        self.num_layers = num_layers
        self.c_pad = 4                     # RGB zero-padded to 4 -> K % 128 == 0

        D = self.hidden_size
        P = patch_size
        K = P * P * self.c_pad
        N = (image_size // P) ** 2
        self.num_tokens = N
        hd = D // num_heads

        # Tile sizing: x/q/k/v tiles + (H, tq, tk) scores + double-buffered
        # weights stay well under ~24 MiB for tq=tk=256, which fits v7x's
        # 64 MiB physical VMEM as well as v5e/v6e's 128 MiB.
        self.q_tile = q_tile if q_tile is not None else min(N, 256)
        self.kv_tile = kv_tile if kv_tile is not None else min(N, 256)
        self.token_tile = min(N, 512)
        assert N % self.q_tile == 0 and N % self.kv_tile == 0
        assert N % self.token_tile == 0

        if key is None:
            key = jax.random.PRNGKey(0)
        self._key = key

        def nxt():
            self._key, sub = jax.random.split(self._key)
            return sub

        s = 0.02

        # Patch-embedding weights with the per-channel (x - mean) / std
        # normalization folded in exactly (it is linear per input channel):
        #   W' = W / std_row,  b' = b - (mean_row / std_row) @ W
        # The padded 4th channel has zero weight (and mean 0 / std 1).
        w_raw = s * jax.random.normal(nxt(), (P * P, self.c_pad, D),
                                      jnp.float32)
        w_raw = w_raw.at[:, 3, :].set(0.0)
        w_flat = w_raw.reshape(K, D)
        mean_row = jnp.tile(jnp.array(IMAGENET_MEAN + (0.0,), jnp.float32),
                            P * P)
        std_row = jnp.tile(jnp.array(IMAGENET_STD + (1.0,), jnp.float32),
                           P * P)
        self.patch_w = (w_flat / std_row[:, None]).astype(jnp.bfloat16)
        patch_b = -(mean_row / std_row) @ w_flat                     # (D,)
        pos = s * jax.random.normal(nxt(), (N, D), jnp.float32)
        self.pos_bias = pos + patch_b[None, :]          # conv bias pre-added

        scale = 1.0 / float(hd) ** 0.5
        self.layers = []
        for _ in range(num_layers):
            wqkv = s * jax.random.normal(nxt(), (D, 3 * D), jnp.float32)
            # fold the 1/sqrt(head_dim) attention scale into the Q columns
            wqkv = wqkv.at[:, :D].multiply(scale)
            layer = dict(
                ln1_g=jnp.ones((1, D), jnp.float32),
                ln1_b=jnp.zeros((1, D), jnp.float32),
                wqkv=wqkv.astype(jnp.bfloat16),
                bqkv=jnp.zeros((1, 3 * D), jnp.float32),
                wo=(s * jax.random.normal(nxt(), (D, D), jnp.float32)
                    ).astype(jnp.bfloat16),
                bo=jnp.zeros((1, D), jnp.float32),
                ln2_g=jnp.ones((1, D), jnp.float32),
                ln2_b=jnp.zeros((1, D), jnp.float32),
                w1=(s * jax.random.normal(nxt(), (D, ffn_dim), jnp.float32)
                    ).astype(jnp.bfloat16),
                b1=jnp.zeros((1, ffn_dim), jnp.float32),
                w2=(s * jax.random.normal(nxt(), (ffn_dim, D), jnp.float32)
                    ).astype(jnp.bfloat16),
                b2=jnp.zeros((1, D), jnp.float32),
            )
            self.layers.append(layer)

    def __call__(self, images):
        # images: (B, H, W, 3) float32 raw pixels, NHWC.
        B, Himg, Wimg, C = images.shape
        P = self.patch_size
        Hp, Wp = Himg // P, Wimg // P
        N = Hp * Wp
        assert N == self.num_tokens and C == 3

        # Host-side patch gather in bf16, channel dim zero-padded to 4 so the
        # stem contraction (K = P*P*4 = 256) is lane-dense.
        # TODO(synk): express this gather through the stem kernel's BlockSpec
        # index_map over (batch, patch-row) to drop this extra HBM pass.
        x = images.astype(jnp.bfloat16)
        x = jnp.pad(x, ((0, 0), (0, 0), (0, 0), (0, self.c_pad - C)))
        x = x.reshape(B, Hp, P, Wp, P, self.c_pad).transpose(0, 1, 3, 2, 4, 5)
        x = x.reshape(B, N, P * P * self.c_pad)

        # patch/conv-stem embedding + positional embedding (+ folded bias)
        x = patch_embed(x, self.patch_w, self.pos_bias,
                        token_tile=self.token_tile)

        # transformer encoder layers: LN1+QKV call, then flash attn+FFN call
        for li, params in enumerate(self.layers):
            q, k, v = qkv_proj(x, params, token_tile=self.token_tile)
            out_dtype = (jnp.float32 if li == self.num_layers - 1
                         else jnp.bfloat16)
            x = attn_ffn(x, q, k, v, params, num_heads=self.num_heads,
                         q_tile=self.q_tile, kv_tile=self.kv_tile,
                         out_dtype=out_dtype)

        # image_features: (B, num_tokens, hidden_size=256)
        return x


# ----------------------------- pure-jnp reference ---------------------------

def _reference_forward(tower, images):
    B, Himg, Wimg, C = images.shape
    P = tower.patch_size
    Hp, Wp = Himg // P, Wimg // P
    N = Hp * Wp
    Cp = tower.c_pad
    D = tower.hidden_size
    H = tower.num_heads
    hd = D // H

    x = images.astype(jnp.float32)
    x = jnp.pad(x, ((0, 0), (0, 0), (0, 0), (0, Cp - C)))
    x = x.reshape(B, Hp, P, Wp, P, Cp).transpose(0, 1, 3, 2, 4, 5)
    x = x.reshape(B, N, P * P * Cp)
    x = x @ tower.patch_w.astype(jnp.float32) + tower.pos_bias[None]

    def ln(y, g, b, eps=1e-5):
        mu = y.mean(-1, keepdims=True)
        var = ((y - mu) ** 2).mean(-1, keepdims=True)
        return (y - mu) * lax.rsqrt(var + eps) * g + b

    for p_ in tower.layers:
        h1 = ln(x, p_["ln1_g"], p_["ln1_b"])
        qkv = h1 @ p_["wqkv"].astype(jnp.float32) + p_["bqkv"]
        q, k, v = qkv[..., :D], qkv[..., D:2 * D], qkv[..., 2 * D:]
        q = q.reshape(B, N, H, hd).transpose(0, 2, 1, 3)
        k = k.reshape(B, N, H, hd).transpose(0, 2, 1, 3)
        v = v.reshape(B, N, H, hd).transpose(0, 2, 1, 3)
        s = jnp.einsum('bhqd,bhkd->bhqk', q, k)    # scale folded into weights
        a = jax.nn.softmax(s, axis=-1)
        o = jnp.einsum('bhqk,bhkd->bhqd', a, v)
        o = o.transpose(0, 2, 1, 3).reshape(B, N, D)
        o = o @ p_["wo"].astype(jnp.float32) + p_["bo"]
        x = x + o
        h2 = ln(x, p_["ln2_g"], p_["ln2_b"])
        h2 = jnp.maximum(h2 @ p_["w1"].astype(jnp.float32) + p_["b1"], 0.0)
        h2 = h2 @ p_["w2"].astype(jnp.float32) + p_["b2"]
        x = x + h2
    return x


if __name__ == "__main__":
    key = jax.random.PRNGKey(0)
    key_params, key_img = jax.random.split(key)

    # q_tile/kv_tile of 8 at N=16 exercises the multi-KV-tile online-softmax
    # path (grid (B, 2, 2)).
    tower = GroundingDINOVisionTowerPallas(
        image_size=32, patch_size=8, num_heads=8, ffn_dim=512,
        num_layers=2, q_tile=8, kv_tile=8, key=key_params)

    # small synthetic "batch of images", raw pixel range
    images = jax.random.uniform(key_img, (2, 32, 32, 3),
                                dtype=jnp.float32, minval=0.0, maxval=255.0)

    feats = tower(images)
    feats = jax.block_until_ready(feats)

    assert feats.shape == (2, 16, 256), feats.shape
    assert feats.dtype == jnp.float32
    assert bool(jnp.all(jnp.isfinite(feats)))

    ref = _reference_forward(tower, images)
    max_err = float(jnp.max(jnp.abs(feats - ref)))
    assert max_err < 0.1, f"max abs err vs reference: {max_err}"

    print("KERNEL_OK")
</pallas_src>

<mosaic_0001>
module attributes {stable_mosaic.version = 11 : i64} {
  func.func @_stem_kernel(%arg0: i32, %arg1: i32, %arg2: memref<1x16x256xbf16, #tpu.memory_space<vmem>>, %arg3: memref<256x256xbf16, #tpu.memory_space<vmem>>, %arg4: memref<16x256xf32, #tpu.memory_space<vmem>>, %arg5: memref<1x16x256xbf16, #tpu.memory_space<vmem>>) attributes {dimension_semantics = [#tpu.dimension_semantics<parallel>, #tpu.dimension_semantics<parallel>], iteration_bounds = array<i64: 2, 1>, scalar_prefetch = 0 : i64, scratch_operands = 0 : i64, tpu.core_type = #tpu.core_type<tc>, window_params = [{transform_indices = @transform_0, window_bounds = array<i64: 1, 16, 256>}, {pipeline_mode = #tpu.pipeline_mode<synchronous>, transform_indices = @transform_1, window_bounds = array<i64: 256, 256>}, {transform_indices = @transform_2, window_bounds = array<i64: 16, 256>}, {transform_indices = @transform_3, window_bounds = array<i64: 1, 16, 256>}]} {
    %c0 = arith.constant 0 : index
    %c0_0 = arith.constant 0 : index
    %c0_1 = arith.constant 0 : index
    %0 = vector.load %arg2[%c0, %c0_0, %c0_1] : memref<1x16x256xbf16, #tpu.memory_space<vmem>>, vector<1x16x256xbf16>
    %1 = vector.shape_cast %0 : vector<1x16x256xbf16> to vector<16x256xbf16>
    %c0_2 = arith.constant 0 : index
    %c0_3 = arith.constant 0 : index
    %2 = vector.load %arg3[%c0_2, %c0_3] : memref<256x256xbf16, #tpu.memory_space<vmem>>, vector<256x256xbf16>
    %cst = arith.constant dense<0.000000e+00> : vector<16x256xf32>
    %3 = tpu.matmul %1, %2, %cst {dimension_numbers = #tpu.dot_dimension_numbers<[1], [0], [0], [1], [0, 0, 1, 1], [], []>} : vector<16x256xbf16>, vector<256x256xbf16>, vector<16x256xf32> -> vector<16x256xf32>
    %c0_4 = arith.constant 0 : index
    %c0_5 = arith.constant 0 : index
    %4 = vector.load %arg4[%c0_4, %c0_5] : memref<16x256xf32, #tpu.memory_space<vmem>>, vector<16x256xf32>
    %5 = arith.addf %3, %4 : vector<16x256xf32>
    %6 = arith.truncf %5 : vector<16x256xf32> to vector<16x256xbf16>
    %c0_6 = arith.constant 0 : index
    %c0_7 = arith.constant 0 : index
    %c0_8 = arith.constant 0 : index
    %7 = vector.load %arg5[%c0_6, %c0_7, %c0_8] : memref<1x16x256xbf16, #tpu.memory_space<vmem>>, vector<1x16x256xbf16>
    %8 = vector.shape_cast %7 : vector<1x16x256xbf16> to vector<16x256xbf16>
    %9 = vector.shape_cast %6 : vector<16x256xbf16> to vector<1x16x256xbf16>
    tpu.vector_store %arg5[%c0_6, %c0_7, %c0_8], %9 {strides = array<i32>} : memref<1x16x256xbf16, #tpu.memory_space<vmem>>, vector<1x16x256xbf16>,
    return
  }
  func.func @transform_0(%arg0: i32, %arg1: i32) -> (i32, i32, i32) {
    %c0_i32 = arith.constant 0 : i32
    %c0_i32_0 = arith.constant 0 : i32
    return %arg0, %arg1, %c0_i32 : i32, i32, i32
  }
  func.func @transform_1(%arg0: i32, %arg1: i32) -> (i32, i32) {
    %c0_i32 = arith.constant 0 : i32
    %c0_i32_0 = arith.constant 0 : i32
    %c0_i32_1 = arith.constant 0 : i32
    return %c0_i32, %c0_i32_0 : i32, i32
  }
  func.func @transform_2(%arg0: i32, %arg1: i32) -> (i32, i32) {
    %c0_i32 = arith.constant 0 : i32
    %c0_i32_0 = arith.constant 0 : i32
    return %arg1, %c0_i32 : i32, i32
  }
  func.func @transform_3(%arg0: i32, %arg1: i32) -> (i32, i32, i32) {
    %c0_i32 = arith.constant 0 : i32
    %c0_i32_0 = arith.constant 0 : i32
    return %arg0, %arg1, %c0_i32 : i32, i32, i32
  }
}

</mosaic_0001>

<bundles_post_ra>
// kernel: tpu_custom_call.1
= control target key start
LH: loop header
LB: loop body
LE: loop exit
PB: predicated region body
PF: predicated region fallthrough
CT: control target
= control target key end

     0   :  { %8 = vsyncpa [#allocation3], 0  ;;  %s1311_s0 = inlined_call_operand.hbm [shape: bf16[2,16,256], index: 0, kind: input, shape index: {}]   ;;  %s1312_s1 = inlined_call_operand.hbm [shape: bf16[256,256], index: 1, kind: input, shape index: {}]   ;;  %s1313_s2 = inlined_call_operand.hbm [shape: f32[16,256], index: 2, kind: input, shape index: {}]   ;;  %s1314_s3 = inlined_call_operand.hbm [shape: bf16[2,16,256], index: 3, kind: output, shape index: {}]  }
   0x1   :  { %10 = vsyncpa [#allocation3 + $0x1], 0 }
   0x2   :  { %11 = vsyncpa [#allocation6], 0 }
   0x3   :  { %12 = vsyncpa [#allocation4], 0 }
   0x4   :  { %14 = vsyncpa [#allocation4 + $0x1], 0  ;;  %s1042_s12 = smov 0   ;;  %s1044_s13 = smov 0  }
   0x5   :  { %s1046_s14 = smov 0   ;;  %s1048_s15 = smov 0  }
   0x6   :  { %s1050_s16 = smov 0   ;;  %s1052_s17 = smov 0  }
   0x7 LB: > { %s639_s18 = sadd.s32 4294967295, %s1010_s17   ;;  %s640_s19 = sadd.s32 4294967294, %s1010_s17   ;;  %s1010_s17 = sphi %s1052_s17, %s20_s17   ;;  %s1006_s16 = sphi %s1050_s16, %s1336_s16   ;;  %s1002_s15 = sphi %s1048_s15, %s1335_s15   ;;  %s998_s14 = sphi %s1046_s14, %s1334_s14   ;;  %s994_s13 = sphi %s1044_s13, %s1333_s13   ;;  %s990_s12 = sphi %s1042_s12, %s1332_s12  }
   0x8   : > { %p54_p0 = scmp.ne.s32.totalorder %s994_s13, %s990_s12  ;;  %p1076_p1 = scmp.eq.s32.totalorder %s639_s18, 0 }
   0x9   : > { %p1080_p2 = scmp.eq.s32.totalorder %s639_s18, 1  ;;  %p133_p3 = scmp.eq.s32.totalorder %s640_s19, 1 }
   0xa   : > { %s1319_s20 = scalar_select %p1076_p1, 1, 0 }
   0xb   : > { %p1086_p4 = por %p1076_p1, %p54_p0  ;;  %p641_p5 = scmp.ge.s32.totalorder %s1010_s17, 1 }
   0xc   : > { %p1091_p6 = por %p133_p3, %p54_p0  ;;  %p140_p7 = scmp.lt.s32.totalorder %s1010_s17, 3 }
   0xd   : > { %s1321_s22 = scalar_select %p1086_p4, 1, 0 }
   0xe   : > { %s1322_s23 = scalar_select %p1091_p6, 1, 0 }
   0xf   : > { %p1096_p8 = pnand %p641_p5, %p140_p7  ;;  %s1012_s25 = smov [#allocation5]  }
  0x10   : > { %s152_s26 = sshll.u32 %s1012_s25, 4  ;;  %s1013_s28 = smov [#allocation7]   ;;  %s1100_s26 = int_to_ptr.vmem [resolvable:$true] %s152_s26 }
  0x11   : > { %p710_p9 = pneg %p1096_p8  ;;  %s169_s29 = sshll.u32 %s1013_s28, 4  ;;  %s1111_s29 = int_to_ptr.vmem [resolvable:$true] %s169_s29 }
  0x12   : > { %s838_s5 = scalar_lea.hbm %s1312_s1, 4096 }
  0x13   : > { %p1107_p11 = pnand %p710_p9, %p1076_p1  ;;  %p839_p12 = scmp.ne.s32.totalorder %s1312_s1, %s838_s5 }
  0x14   : > { %p845_p5 = scmp.lt.u32.totalorder %s838_s5, %s1312_s1 }
  0x15   : > { %p840_p13 = pneg %p1107_p11 }
  0x17   : > { %p841_p0 = pnand %p840_p13, %p839_p12 }
  0x19   : > { %p842_p3 = pneg %p841_p0 }
  0x1b   : > { %p847_p7 = pnand %p845_p5, %p842_p3 }
  0x1d   : > { %850 = shalt.err (!%p847_p7)
}
  0x1e   : > { %s851_s10 = scalar_lea.vmem %s1100_s26, 4096  ;;  %p859_p1 = scmp.lt.s32.totalorder %s1100_s26, %s1100_s26 }
  0x1f   : > { %p852_p9 = scmp.ne.s32.totalorder %s1100_s26, %s851_s10  ;;  %p860_p12 = scmp.lt.s32.totalorder %s851_s10, %s851_s10 }
  0x21   : > { %p854_p10 = pnand %p852_p9, %p840_p13  ;;  %p861_p0 = por %p860_p12, %p859_p1 }
  0x23   : > { %p855_p6 = pneg %p854_p10 }
  0x25   : > { %p862_p4 = pnand %p861_p0, %p855_p6 }
  0x27   : > { %865 = shalt.err (!%p862_p4)
}
  0x28   : > { %s1014_s11 = smov 128   ;;  %s1015_s18 = smov 8  }
  0x29   : > { %713 = dma.hbm_to_vmem [thread:$0]  (!%p1107_p11), %s1312_s1, 4096, %s1100_s26, [#allocation6], %s1014_s11, %s1014_s11, %s1015_s18  }
  0x2a   : > { %s866_s4 = scalar_lea.hbm %s1313_s2, 512 }
  0x2b   : > { %p867_p1 = scmp.ne.s32.totalorder %s1313_s2, %s866_s4  ;;  %p873_p10 = scmp.lt.u32.totalorder %s866_s4, %s1313_s2 }
  0x2d   : > { %p869_p4 = pnand %p867_p1, %p840_p13 }
  0x2f   : > { %p870_p6 = pneg %p869_p4 }
  0x31   : > { %p875_p3 = pnand %p873_p10, %p870_p6 }
  0x33   : > { %878 = shalt.err (!%p875_p3)
}
  0x34   : > { %s879_s26 = scalar_lea.vmem %s1111_s29, 512  ;;  %p887_p12 = scmp.lt.s32.totalorder %s1111_s29, %s1111_s29 }
  0x35   : > { %p880_p5 = scmp.ne.s32.totalorder %s1111_s29, %s879_s26  ;;  %p888_p0 = scmp.lt.s32.totalorder %s879_s26, %s879_s26 }
  0x37   : > { %p882_p7 = pnand %p880_p5, %p840_p13  ;;  %p889_p1 = por %p888_p0, %p887_p12 }
  0x39   : > { %p883_p9 = pneg %p882_p7 }
  0x3b   : > { %p890_p4 = pnand %p889_p1, %p883_p9 }
  0x3d   : > { %893 = shalt.err (!%p890_p4)
}
  0x3e   : > { %s1016_s9 = smov 256   ;;  %s1017_s10 = smov 16  }
  0x3f   : > { %716 = dma.hbm_to_vmem [thread:$0]  (!%p1107_p11), %s1313_s2, 512, %s1111_s29, [#allocation6], %s1016_s9, %s1016_s9, %s1017_s10  }
  0x40   : > { %s32_s28 = sadd.s32 1, %s1006_s16  ;;  %s41_s30 = sadd.s32 1, %s998_s14 }
  0x41   : > { %p34_p13 = scmp.ge.s32.totalorder %s32_s28, 2  ;;  %p48_p6 = scmp.ne.s32.totalorder %s998_s14, %s994_s13 }
  0x42   : > { %p49_p10 = scmp.eq.s32.totalorder %s1010_s17, 0  ;;  %p727_p3 = scmp.lt.s32.totalorder %s1010_s17, 2 }
  0x43   : > { %s1338_s28 = smov (%p34_p13, %s32_s28), 0  ;;  %p1178_p7 = por %p1080_p2, %p48_p6 }
  0x44   : > { %p50_p5 = por %p49_p10, %p48_p6  ;;  %s36_s27 = ssub.s32 %s1006_s16, %s1338_s28 }
  0x45   : > { %s1325_s4 = scalar_select %p1178_p7, 1, 0 }
  0x46   : > { %s183_s5 = sand.u32 1, %s998_s14   ;;  %p39_p9 = scmp.eq.s32.totalorder %s36_s27, 0 }
  0x47   : > { %s645_s29 = sshll.u32 %s183_s5, 4  ;;  %s694_s6 = sshll.u32 %s1006_s16, 8 }
  0x48   : > { %s1187_s7 = scalar_select %p39_p9, %s998_s14, %s41_s30  }
  0x49   : > { %s1192_s9 = scalar_lea.hbm %s1311_s0, %s694_s6  ;;  %s187_s21 = scalar_lea.vmem [#allocation2], %s645_s29 }
  0x4a   : > { %s197_s10 = sshll.u32 %s187_s21, 4  ;;  %p1196_p2 = pnand %p727_p3, %p50_p5  ;;  %s1200_s10 = int_to_ptr.vmem [resolvable:$true] %s197_s10 }
  0x4b   : > { %s1202_s25 = scalar_lea.sflag [#allocation3], %s183_s5  ;;  %s894_s30 = scalar_lea.hbm %s1192_s9, 256 }
  0x4c   : > { %p895_p11 = scmp.ne.s32.totalorder %s1192_s9, %s894_s30  ;;  %p896_p12 = pneg %p1196_p2 }
  0x4d   : > { %s899_s6 = scalar_lea.hbm %s1311_s0, 512  ;;  %p900_p4 = scmp.lt.u32.totalorder %s1192_s9, %s1311_s0 }
  0x4e   : > { %p897_p0 = pnand %p896_p12, %p895_p11  ;;  %p901_p13 = scmp.lt.u32.totalorder %s899_s6, %s894_s30 }
  0x4f   : > { %p903_p10 = scmp.lt.u32.totalorder %s894_s30, %s1192_s9 }
  0x50   : > { %p898_p1 = pneg %p897_p0  ;;  %p902_p6 = por %p901_p13, %p900_p4 }
  0x52   : > { %p904_p3 = por %p903_p10, %p902_p6 }
  0x54   : > { %p905_p5 = pnand %p904_p3, %p898_p1 }
  0x56   : > { %908 = shalt.err (!%p905_p5)
}
  0x57   : > { %s909_s5 = scalar_lea.vmem %s1200_s10, 256  ;;  %s1018_s21 = smov [#allocation2]  }
  0x58   : > { %p910_p9 = scmp.ne.s32.totalorder %s1200_s10, %s909_s5  ;;  %s914_s27 = sshll.u32 %s1018_s21, 4  ;;  %s915_s27 = int_to_ptr.vmem [resolvable:$false] %s914_s27 }
  0x59   : > { %s916_s29 = scalar_lea.vmem %s915_s27, 512  ;;  %p917_p7 = scmp.lt.s32.totalorder %s1200_s10, %s915_s27 }
  0x5a   : > { %p912_p11 = pnand %p910_p9, %p896_p12  ;;  %p918_p4 = scmp.lt.s32.totalorder %s916_s29, %s909_s5 }
  0x5c   : > { %p913_p0 = pneg %p912_p11  ;;  %p919_p13 = por %p918_p4, %p917_p7 }
  0x5e   : > { %p920_p6 = pnand %p919_p13, %p913_p0 }
  0x60   : > { %923 = shalt.err (!%p920_p6)
}
  0x61   : > { %720 = dma.hbm_to_vmem [thread:$0]  (!%p1196_p2), %s1192_s9, 256, %s1200_s10, %s1202_s25, %s1014_s11, %s1014_s11, %s1015_s18  }
  0x62   : > { %209 = sbr.rel (%p1096_p8) target bundleno = 408 (0x198), region = 32  ;;  %s1236_s30 = sand.u32 (!%p1096_p8), 1, %s994_s13  }
  0x63   : > { %s649_s6 = sshll.u32 (!%p1096_p8), %s1236_s30, 4  ;;  %s212_s8 = scalar_lea.sflag (!%p1096_p8), [#allocation3], %s1236_s30 }
  0x64   : > { %s1242_s19 = scalar_lea.vmem (!%p1096_p8), [#allocation2], %s649_s6  ;;  %p1327_p7 = scmp.ne.s32.totalorder (!%p1096_p8), %s1321_s22, 0 }
  0x69   : > { %977 = dma.done.wait (%p1327_p7), %s212_s8, 256  }
  0x6a   : > { %979 = vsyncadd (%p1327_p7), %s212_s8, 4294967040  ;;  %p1328_p2 = scmp.ne.s32.totalorder %s1319_s20, 0 }
  0x6c   : > { %981 = dma.done.wait (%p1328_p2), [#allocation6], 4608  }
  0x6d   : > { %983 = vsyncadd (%p1328_p2), [#allocation6], 4294962688  ;;  %v787_v0 = vld [vmem:[#allocation5 + $0x4] ss:$8 sps:$4 sm:$0xff]   ;;  %v789_v1 = vld [vmem:[#allocation5] ss:$8 sps:$4 sm:$0xff]  }
  0x6e   : > { %457 = vmatprep.subr.bf16.mxu0 %v787_v0  ;;  %v790_v2 = vld [vmem:[#allocation5 + $0x14] ss:$8 sps:$4 sm:$0xff]   ;;  %v792_v3 = vld [vmem:[#allocation5 + $0x10] ss:$8 sps:$4 sm:$0xff]   ;;  %v793_v4 = vld [vmem:[#allocation5 + $0x24] ss:$8 sps:$4 sm:$0xff]  }
  0x6f   : > { %458 = vmatpush1.bf16.msra.mxu0 %v789_v1  ;;  %v795_v5 = vld [vmem:[#allocation5 + $0x20] ss:$8 sps:$4 sm:$0xff]   ;;  %v796_v6 = vld [vmem:[#allocation5 + $0x34] ss:$8 sps:$4 sm:$0xff]   ;;  %v798_v7 = vld [vmem:[#allocation5 + $0x30] ss:$8 sps:$4 sm:$0xff]  }
  0x70   : > { %459 = vmatprep.subr.bf16.mxu0 %v790_v2  ;;  %v799_v8 = vld [vmem:[#allocation5 + $0x44] ss:$8 sps:$4 sm:$0xff]   ;;  %v801_v9 = vld [vmem:[#allocation5 + $0x40] ss:$8 sps:$4 sm:$0xff]   ;;  %v802_v10 = vld [vmem:[#allocation5 + $0x54] ss:$8 sps:$4 sm:$0xff]  }
  0x71   : > { %v804_v11 = vld [vmem:[#allocation5 + $0x50] ss:$8 sps:$4 sm:$0xff]   ;;  %v805_v12 = vld [vmem:[#allocation5 + $0x64] ss:$8 sps:$4 sm:$0xff]   ;;  %v807_v14 = vld [vmem:[#allocation5 + $0x60] ss:$8 sps:$4 sm:$0xff]  }
  0x72   : > { %v837_v13 = vld [vmem:[%s1242_s19 + $0x4] ss:$8 sps:$4 sm:$0xff]   ;;  %v810_v16 = vld [vmem:[#allocation5 + $0x70] ss:$8 sps:$4 sm:$0xff]   ;;  %v813_v18 = vld [vmem:[#allocation5 + $0x80] ss:$8 sps:$4 sm:$0xff]  }
  0x73   : > { %460 = vmatpush1.bf16.msra.mxu0 %v792_v3  ;;  %v808_v15 = vld [vmem:[#allocation5 + $0x74] ss:$8 sps:$4 sm:$0xff]   ;;  %489 = vmatprep.mubr.bf16.mxu0 %v837_v13  ;;  %v811_v17 = vld [vmem:[#allocation5 + $0x84] ss:$8 sps:$4 sm:$0xff]   ;;  %v816_v20 = vld [vmem:[#allocation5 + $0x90] ss:$8 sps:$4 sm:$0xff]  }
  0x74   : > { %461 = vmatprep.subr.bf16.mxu0 %v793_v4  ;;  %v814_v19 = vld [vmem:[#allocation5 + $0x94] ss:$8 sps:$4 sm:$0xff]   ;;  %v817_v21 = vld [vmem:[#allocation5 + $0xa4] ss:$8 sps:$4 sm:$0xff]   ;;  %v819_v22 = vld [vmem:[#allocation5 + $0xa0] ss:$8 sps:$4 sm:$0xff]  }
  0x75   : > { %v820_v23 = vld [vmem:[#allocation5 + $0xb4] ss:$8 sps:$4 sm:$0xff]   ;;  %v822_v24 = vld [vmem:[#allocation5 + $0xb0] ss:$8 sps:$4 sm:$0xff]   ;;  %v823_v25 = vld [vmem:[#allocation5 + $0xc4] ss:$8 sps:$4 sm:$0xff]  }
  0x76   : > { %v825_v26 = vld [vmem:[#allocation5 + $0xc0] ss:$8 sps:$4 sm:$0xff]   ;;  %v826_v27 = vld [vmem:[#allocation5 + $0xd4] ss:$8 sps:$4 sm:$0xff]   ;;  %v828_v28 = vld [vmem:[#allocation5 + $0xd0] ss:$8 sps:$4 sm:$0xff]  }
  0x77   : > { %462 = vmatpush1.bf16.msra.mxu0 %v795_v5  ;;  %v829_v29 = vld [vmem:[#allocation5 + $0xe4] ss:$8 sps:$4 sm:$0xff]   ;;  %v831_v30 = vld [vmem:[#allocation5 + $0xe0] ss:$8 sps:$4 sm:$0xff]   ;;  %v832_v31 = vld [vmem:[#allocation5 + $0xf4] ss:$8 sps:$4 sm:$0xff]  }
  0x78   : > { %463 = vmatprep.subr.bf16.mxu0 %v796_v6  ;;  %v834_v32 = vld [vmem:[#allocation5 + $0xf0] ss:$8 sps:$4 sm:$0xff]   ;;  %v283_v34 = vld [vmem:[#allocation7] sm:$0xff]  ;;  %v284_v35 = vld [vmem:[#allocation7 + $0x8] sm:$0xff]  ;;  %s245_s20 = scalar_lea.vmem [#allocation8], %s649_s6  ;;  %s697_s24 = sshll.u32 %s1002_s15, 8 }
  0x79   : > { %v835_v33 = vld [vmem:[%s1242_s19] ss:$8 sps:$4 sm:$0xff]   ;;  %s531_s22 = sshll.u32 %s245_s20, 4  ;;  %s1262_s9 = scalar_lea.hbm %s1314_s3, %s697_s24  ;;  %s1257_s22 = int_to_ptr.vmem [resolvable:$true] %s531_s22 }
  0x7a   : > { %v285_v37 = vld [vmem:[#allocation7 + $0x10] sm:$0xff]  ;;  %v286_v40 = vld [vmem:[#allocation7 + $0x18] sm:$0xff]  ;;  %s515_s10 = scalar_lea.sflag [#allocation4], %s1236_s30  ;;  %s924_s25 = scalar_lea.vmem %s1257_s22, 256 }
  0x7b   : > { %464 = vmatpush1.bf16.msra.mxu0 %v798_v7  ;;  %p925_p8 = scmp.ne.s32.totalorder %s1257_s22, %s924_s25  ;;  %p1329_p12 = scmp.ne.s32.totalorder %s1325_s4, 0 }
  0x7c   : > { %465 = vmatprep.subr.bf16.mxu0 %v799_v8  ;;  %s1019_s15 = smov [#allocation8]  }
  0x7d   : > { %p926_p1 = pnand %p925_p8, %p1329_p12  ;;  %s928_s26 = sshll.u32 %s1019_s15, 4  ;;  %s929_s26 = int_to_ptr.vmem [resolvable:$false] %s928_s26 }
  0x7e   : > { %s930_s5 = scalar_lea.vmem %s929_s26, 512  ;;  %p931_p3 = scmp.lt.s32.totalorder %s1257_s22, %s929_s26 }
  0x7f   : > { %466 = vmatpush1.bf16.msra.mxu0 %v801_v9  ;;  %p927_p10 = pneg %p926_p1  ;;  %p932_p5 = scmp.lt.s32.totalorder %s930_s5, %s924_s25 }
  0x80   : > { %467 = vmatprep.subr.bf16.mxu0 %v802_v10 }
  0x81   : > { %p933_p9 = por %p932_p5, %p931_p3 }
  0x83   : > { %468 = vmatpush1.bf16.msra.mxu0 %v804_v11  ;;  %p934_p11 = pnand %p933_p9, %p927_p10 }
  0x84   : > { %469 = vmatprep.subr.bf16.mxu0 %v805_v12 }
  0x87   : > { %470 = vmatpush1.bf16.msra.mxu0 %v807_v14 }
  0x88   : > { %471 = vmatprep.subr.bf16.mxu0 %v808_v15 }
  0x8b   : > { %472 = vmatpush1.bf16.msra.mxu0 %v810_v16 }
  0x8c   : > { %473 = vmatprep.subr.bf16.mxu0 %v811_v17 }
  0x8f   : > { %474 = vmatpush1.bf16.msra.mxu0 %v813_v18 }
  0x90   : > { %475 = vmatprep.subr.bf16.mxu0 %v814_v19 }
  0x93   : > { %476 = vmatpush1.bf16.msra.mxu0 %v816_v20 }
  0x94   : > { %477 = vmatprep.subr.bf16.mxu0 %v817_v21 }
  0x97   : > { %478 = vmatpush1.bf16.msra.mxu0 %v819_v22 }
  0x98   : > { %479 = vmatprep.subr.bf16.mxu0 %v820_v23 }
  0x9b   : > { %480 = vmatpush1.bf16.msra.mxu0 %v822_v24 }
  0x9c   : > { %481 = vmatprep.subr.bf16.mxu0 %v823_v25 }
  0x9f   : > { %482 = vmatpush1.bf16.msra.mxu0 %v825_v26 }
  0xa0   : > { %483 = vmatprep.subr.bf16.mxu0 %v826_v27 }
  0xa3   : > { %484 = vmatpush1.bf16.msra.mxu0 %v828_v28 }
  0xa4   : > { %485 = vmatprep.subr.bf16.mxu0 %v829_v29 }
  0xa7   : > { %486 = vmatpush1.bf16.msra.mxu0 %v831_v30 }
  0xa8   : > { %487 = vmatprep.subr.bf16.mxu0 %v832_v31 }
  0xab   : > { %488 = vmatpush1.bf16.msra.mxu0 %v834_v32 }
  0xae   : > { %490 = vmatmul.mubr.bf16.vlgmr.msra.gmra.mrb[0].mxu0 %v835_v33 }
 0x181   : > { %v491_v36 = vpop.f32.mrb[0].mxu0 }
 0x182   : > { %v492_v38 = vadd.f32 %v491_v36, %v283_v34  ;;  %v493_v39 = vpop.f32.mrb[1].mxu0 }
 0x183   : > { %v494_v41 = vadd.f32 %v493_v39, %v284_v35  ;;  %v495_v42 = vpop.f32.mrb[2].mxu0 }
 0x184   : > { %v496_v43 = vadd.f32 %v495_v42, %v285_v37  ;;  %v497_v44 = vpop.f32.mrb[3].mxu0 }
 0x185   : > { %v695_v45 = vpack.c.bf16 %v494_v41, %v492_v38  ;;  %v498_v46 = vadd.f32 %v497_v44, %v286_v40 }
 0x187   : > { %512 = vst [vmem:[%s245_s20] sm:$0xff] %v695_v45  ;;  %v696_v47 = vpack.c.bf16 %v498_v46, %v496_v43 }
 0x189   : > { %513 = vst [vmem:[%s245_s20 + $0x8] sm:$0xff] %v696_v47 }
 0x18a   : > { %937 = shalt.err (!%p934_p11)
}
 0x18b   : > { %s938_s21 = scalar_lea.hbm %s1262_s9, 256  ;;  %s942_s6 = scalar_lea.hbm %s1314_s3, 512 }
 0x18c   : > { %p939_p0 = scmp.ne.s32.totalorder %s1262_s9, %s938_s21  ;;  %p943_p6 = scmp.lt.u32.totalorder %s1262_s9, %s1314_s3 }
 0x18d   : > { %p944_p7 = scmp.lt.u32.totalorder %s942_s6, %s938_s21  ;;  %p946_p8 = scmp.lt.u32.totalorder %s938_s21, %s1262_s9 }
 0x18e   : > { %p940_p4 = pnand %p939_p0, %p1329_p12 }
 0x18f   : > { %p945_p2 = por %p944_p7, %p943_p6 }
 0x190   : > { %p941_p13 = pneg %p940_p4 }
 0x191   : > { %p947_p1 = por %p946_p8, %p945_p2 }
 0x193   : > { %p948_p10 = pnand %p947_p1, %p941_p13 }
 0x195   : > { %951 = shalt.err (!%p948_p10)
}
 0x196   : > { %s1020_s20 = smov 128   ;;  %s1021_s24 = smov 8  }
 0x197   : > { %708 = dma.vmem_to_hbm [thread:$0]  (%p1329_p12), %s1257_s22, 256, %s1262_s9, %s515_s10, %s1020_s20, %s1020_s20, %s1021_s24  }
 0x198 PF: > { %s546_s11 = sand.u32 1, %s990_s12   ;;  %p1330_p3 = scmp.ne.s32.totalorder %s1322_s23, 0 }
 0x199   : > { %p1331_p5 = scmp.ge.s32.totalorder %s1010_s17, 2  ;;  %s547_s18 = scalar_lea.sflag [#allocation4], %s546_s11 }
 0x19b   : > { %p722_p9 = pnand %p1331_p5, %p1330_p3 }
 0x19d   : > { %985 = dma.done.wait (!%p722_p9), %s547_s18, 256  }
 0x19e   : > { %987 = vsyncadd (!%p722_p9), %s547_s18, 4294967040  ;;  %s20_s17 = sadd.s32 1, %s1010_s17   ;;  %s1332_s12 = smov %s994_s13 }
 0x19f   : > { %p17_p11 = scmp.ge.s32.totalorder %s20_s17, 4   ;;  %s1333_s13 = smov %s998_s14 }
 0x1a0   : > { %s1334_s14 = smov %s1187_s7  ;;  %s1335_s15 = smov %s1006_s16 }
 0x1a1   : > { %s1336_s16 = smov %s1338_s28  ;;  %19 = sbr.rel (!%p17_p11) target bundleno = 7 (0x7), region = 86 }
 0x1a8   :  { %552 = vsyncpa [#allocation3], 1 }
 0x1a9   :  { %554 = vsyncpa [#allocation3 + $0x1], 1 }
 0x1aa   :  { %555 = vsyncpa [#allocation6], 1 }
 0x1ab   :  { %556 = vsyncpa [#allocation4], 1 }
 0x1ac   :  { %558 = vsyncpa [#allocation4 + $0x1], 1 }

</bundles_post_ra>
